<compile_context>
chip_gen: v6e
topology: v6e:2x2x1
jax: 0.10.0
libtpu: 0.0.40
codegen_flags: <defaults>
</compile_context>

<pallas_src>
import functools

import jax
import jax.numpy as jnp
import numpy as np
from jax.experimental import pallas as pl
from jax.experimental.pallas import tpu as pltpu


def _ohem_ce_kernel(logits_ref, labels_ref, loss_ref, stats_ref, *,
                    thresh, ignore_index, hw, need_mask):
    # logits_ref: (C, TP), labels_ref/loss_ref: (1, TP),
    # stats_ref: (8, 128) per-tile partials (row 0, lanes 0..2:
    #            sum_hard, cnt_hard, cnt_valid).
    tp = labels_ref.shape[1]
    logits = logits_ref[...].astype(jnp.float32)      # compute in f32 (v5e-safe)
    labels = labels_ref[...]                          # (1, TP) int32

    valid = labels != ignore_index                    # (1, TP)
    if need_mask:
        # The last pixel tile may run past H*W; those lanes come from an
        # out-of-bounds block read (garbage), so mask them explicitly.
        lane = jax.lax.broadcasted_iota(jnp.int32, (1, tp), 1)
        in_bounds = (pl.program_id(1) * tp + lane) < hw
        valid = valid & in_bounds

    # Numerically-stable log-sum-exp over the class (sublane) axis.
    m = jnp.max(logits, axis=0, keepdims=True)                        # (1, TP)
    lse = m + jnp.log(jnp.sum(jnp.exp(logits - m), axis=0, keepdims=True))

    # Gather the label logit via a one-hot mask (avoids dynamic gather).
    class_ids = jax.lax.broadcasted_iota(jnp.int32, logits.shape, 0)  # (C, TP)
    onehot = (class_ids == labels).astype(jnp.float32)                # (C, TP)
    label_logit = jnp.sum(logits * onehot, axis=0, keepdims=True)     # (1, TP)

    loss = jnp.where(valid, lse - label_logit, 0.0)                   # (1, TP)
    loss_ref[...] = loss                                              # lane-dense store

    # OHEM partial statistics for this tile (ignored / padded pixels have
    # loss 0, never > thresh for prob-thresh < 1, excluded from cnt_valid).
    hard = loss > thresh
    sum_hard = jnp.sum(jnp.where(hard, loss, 0.0))
    cnt_hard = jnp.sum(hard.astype(jnp.float32))
    cnt_valid = jnp.sum(valid.astype(jnp.float32))

    row = jax.lax.broadcasted_iota(jnp.int32, stats_ref.shape, 0)
    col = jax.lax.broadcasted_iota(jnp.int32, stats_ref.shape, 1)
    stats_ref[...] = (
        jnp.where((row == 0) & (col == 0), sum_hard, 0.0)
        + jnp.where((row == 0) & (col == 1), cnt_hard, 0.0)
        + jnp.where((row == 0) & (col == 2), cnt_valid, 0.0))


def ohem_ce_loss(logits, labels, *, thresh=0.7, ignore_index=255,
                 block_bytes=4 * 1024 * 1024):
    """OhemCELoss.forward. logits: (N, C, H, W), labels: (N, H, W) int."""
    N, C, H, W = logits.shape
    HW = H * W
    P = N * HW
    thresh_val = float(-np.log(thresh))   # matches -torch.log(tensor(thresh))

    # Free reshapes only (contiguous, no transpose): pixels on the lane dim.
    x = logits.reshape(N, C, HW)
    y = labels.reshape(N, 1, HW).astype(jnp.int32)

    # Pixel-tile size targeting ~block_bytes of per-step traffic; trailing
    # block dim must be a multiple of 128 or the full extent HW.
    per_pixel = C * jnp.dtype(logits.dtype).itemsize + 8   # logits + labels + loss
    tp = max(128, (block_bytes // per_pixel) // 128 * 128)
    if HW <= tp:
        tp = HW
    num_hw = int(pl.cdiv(HW, tp))
    hw_out = num_hw * tp
    need_mask = hw_out != HW

    kernel = functools.partial(_ohem_ce_kernel, thresh=thresh_val,
                               ignore_index=ignore_index, hw=HW,
                               need_mask=need_mask)

    loss3d, stats = pl.pallas_call(
        kernel,
        out_shape=(jax.ShapeDtypeStruct((N, 1, hw_out), jnp.float32),
                   jax.ShapeDtypeStruct((N, num_hw * 8, 128), jnp.float32)),
        grid=(N, num_hw),
        in_specs=[
            pl.BlockSpec((None, C, tp), lambda n, i: (n, 0, i)),
            pl.BlockSpec((None, 1, tp), lambda n, i: (n, 0, i)),
        ],
        out_specs=(
            pl.BlockSpec((None, 1, tp), lambda n, i: (n, 0, i)),
            pl.BlockSpec((None, 8, 128), lambda n, i: (n, i, 0)),
        ),
        compiler_params=pltpu.CompilerParams(
            dimension_semantics=("parallel", "parallel"),
            vmem_limit_bytes=32 * 1024 * 1024),
    )(x, y)

    loss = (loss3d[:, 0, :HW] if need_mask else loss3d[:, 0, :]).reshape(-1)
    totals = jnp.sum(stats, axis=(0, 1))     # only row 0 / lanes 0..2 nonzero
    sum_hard, cnt_hard, n_valid = totals[0], totals[1], totals[2]

    n_min = n_valid.astype(jnp.int32) // 16

    # Branch 1: enough hard examples above the threshold.
    # Guard 0/0 so a fully-ignored input returns 0.0 instead of NaN
    # (PyTorch would produce NaN via mean of an empty tensor in that case).
    mean_thresh = sum_hard / jnp.maximum(cnt_hard, 1.0)

    # Branch 2: top-k fallback with static upper bound k_max >= n_min, then
    # mask down to the dynamic n_min (avoids an O(P log P) full sort).
    # TODO(synk): dynamic-k top-k has no direct Pallas equivalent; done in JAX.
    k_max = max(P // 16, 1)
    topk_vals = jax.lax.top_k(loss, k_max)[0]
    topk_mask = (jnp.arange(k_max) < n_min).astype(jnp.float32)
    mean_topk = (jnp.sum(topk_vals * topk_mask)
                 / jnp.maximum(n_min, 1).astype(jnp.float32))

    return jnp.where(cnt_hard < n_min.astype(jnp.float32), mean_topk,
                     mean_thresh)


def _reference_ohem(logits, labels, *, thresh=0.7, ignore_index=255):
    """Pure-JAX reference replicating the PyTorch forward."""
    N, C, H, W = logits.shape
    x = jnp.transpose(logits, (0, 2, 3, 1)).reshape(-1, C).astype(jnp.float32)
    y = labels.reshape(-1).astype(jnp.int32)
    logp = jax.nn.log_softmax(x, axis=-1)
    valid = y != ignore_index
    y_safe = jnp.where(valid, y, 0)
    nll = -jnp.take_along_axis(logp, y_safe[:, None], axis=-1)[:, 0]
    loss = jnp.where(valid, nll, 0.0)
    t = float(-np.log(thresh))
    n_min = jnp.sum(valid) // 16
    hard = loss > t
    mean_thresh = jnp.sum(jnp.where(hard, loss, 0.0)) / jnp.sum(
        hard.astype(jnp.float32))
    sd = jnp.sort(loss)[::-1]
    mean_topk = jnp.sum(sd * (jnp.arange(loss.shape[0]) < n_min)) / jnp.maximum(
        n_min, 1).astype(jnp.float32)
    return jnp.where(jnp.sum(hard.astype(jnp.float32)) < n_min, mean_topk,
                     mean_thresh)


if __name__ == "__main__":
    key = jax.random.PRNGKey(0)
    k_logits, k_labels, k_ignore = jax.random.split(key, 3)

    N, C, H, W = 2, 4, 16, 16
    IGNORE = 255

    logits = jax.random.normal(k_logits, (N, C, H, W), dtype=jnp.float32)
    labels = jax.random.randint(k_labels, (N, H, W), 0, C, dtype=jnp.int32)
    # Mark ~10% of pixels as ignored to exercise ignore_index handling.
    ignore_mask = jax.random.bernoulli(k_ignore, 0.1, (N, H, W))
    labels = jnp.where(ignore_mask, IGNORE, labels)

    out = ohem_ce_loss(logits, labels, thresh=0.7, ignore_index=IGNORE)
    out = jax.block_until_ready(out)

    ref = jax.block_until_ready(
        _reference_ohem(logits, labels, thresh=0.7, ignore_index=IGNORE))

    assert np.isfinite(np.asarray(out)), "non-finite loss"
    np.testing.assert_allclose(np.asarray(out), np.asarray(ref),
                               rtol=1e-5, atol=1e-5)
    print("KERNEL_OK")
</pallas_src>

<mosaic_0001>
module attributes {stable_mosaic.version = 11 : i64} {
  func.func @_ohem_ce_kernel(%arg0: i32, %arg1: i32, %arg2: memref<1x4x256xf32, #tpu.memory_space<vmem>>, %arg3: memref<1x1x256xi32, #tpu.memory_space<vmem>>, %arg4: memref<1x1x256xf32, #tpu.memory_space<vmem>>, %arg5: memref<1x8x128xf32, #tpu.memory_space<vmem>>) attributes {dimension_semantics = [#tpu.dimension_semantics<parallel>, #tpu.dimension_semantics<parallel>], iteration_bounds = array<i64: 2, 1>, scalar_prefetch = 0 : i64, scratch_operands = 0 : i64, tpu.core_type = #tpu.core_type<tc>, window_params = [{transform_indices = @transform_0, window_bounds = array<i64: 1, 4, 256>}, {transform_indices = @transform_1, window_bounds = array<i64: 1, 1, 256>}, {transform_indices = @transform_2, window_bounds = array<i64: 1, 1, 256>}, {transform_indices = @transform_3, window_bounds = array<i64: 1, 8, 128>}]} {
    %c0 = arith.constant 0 : index
    %c0_0 = arith.constant 0 : index
    %c0_1 = arith.constant 0 : index
    %0 = vector.load %arg2[%c0, %c0_0, %c0_1] : memref<1x4x256xf32, #tpu.memory_space<vmem>>, vector<1x4x256xf32>
    %1 = vector.shape_cast %0 : vector<1x4x256xf32> to vector<4x256xf32>
    %c0_2 = arith.constant 0 : index
    %c0_3 = arith.constant 0 : index
    %c0_4 = arith.constant 0 : index
    %2 = vector.load %arg3[%c0_2, %c0_3, %c0_4] : memref<1x1x256xi32, #tpu.memory_space<vmem>>, vector<1x1x256xi32>
    %3 = vector.shape_cast %2 : vector<1x1x256xi32> to vector<1x256xi32>
    %c255_i32 = arith.constant 255 : i32
    %4 = vector.broadcast %c255_i32 : i32 to vector<1x256xi32>
    %5 = arith.cmpi ne, %3, %4 : vector<1x256xi32>
    %cst = arith.constant dense<0xFF800000> : vector<256xf32>
    %6 = vector.multi_reduction <maximumf>, %1, %cst [0] : vector<4x256xf32> to vector<256xf32>
    %7 = vector.shape_cast %6 : vector<256xf32> to vector<1x256xf32>
    %8 = vector.broadcast %7 : vector<1x256xf32> to vector<4x256xf32>
    %9 = arith.subf %1, %8 : vector<4x256xf32>
    %10 = math.exp %9 : vector<4x256xf32>
    %cst_5 = arith.constant dense<0.000000e+00> : vector<256xf32>
    %11 = vector.multi_reduction <add>, %10, %cst_5 [0] : vector<4x256xf32> to vector<256xf32>
    %12 = vector.shape_cast %11 : vector<256xf32> to vector<1x256xf32>
    %13 = math.log %12 : vector<1x256xf32>
    %14 = arith.addf %7, %13 : vector<1x256xf32>
    %15 = tpu.iota {dimensions = array<i32: 0>} : vector<4x256xi32>
    %16 = vector.broadcast %3 : vector<1x256xi32> to vector<4x256xi32>
    %17 = arith.cmpi eq, %15, %16 : vector<4x256xi32>
    %18 = arith.extui %17 : vector<4x256xi1> to vector<4x256xi32>
    %19 = arith.sitofp %18 : vector<4x256xi32> to vector<4x256xf32>
    %20 = arith.mulf %1, %19 : vector<4x256xf32>
    %cst_6 = arith.constant dense<0.000000e+00> : vector<256xf32>
    %21 = vector.multi_reduction <add>, %20, %cst_6 [0] : vector<4x256xf32> to vector<256xf32>
    %22 = vector.shape_cast %21 : vector<256xf32> to vector<1x256xf32>
    %23 = arith.subf %14, %22 : vector<1x256xf32>
    %cst_7 = arith.constant 0.000000e+00 : f32
    %24 = vector.broadcast %cst_7 : f32 to vector<1x256xf32>
    %25 = arith.select %5, %23, %24 : vector<1x256xi1>, vector<1x256xf32>
    %c0_8 = arith.constant 0 : index
    %c0_9 = arith.constant 0 : index
    %c0_10 = arith.constant 0 : index
    %26 = vector.load %arg4[%c0_8, %c0_9, %c0_10] : memref<1x1x256xf32, #tpu.memory_space<vmem>>, vector<1x1x256xf32>
    %27 = vector.shape_cast %26 : vector<1x1x256xf32> to vector<1x256xf32>
    %28 = vector.shape_cast %25 : vector<1x256xf32> to vector<1x1x256xf32>
    tpu.vector_store %arg4[%c0_8, %c0_9, %c0_10], %28 {strides = array<i32>} : memref<1x1x256xf32, #tpu.memory_space<vmem>>, vector<1x1x256xf32>,
    %cst_11 = arith.constant 0.356674939 : f32
    %29 = vector.broadcast %cst_11 : f32 to vector<1x256xf32>
    %30 = arith.cmpf ogt, %25, %29 : vector<1x256xf32>
    %cst_12 = arith.constant 0.000000e+00 : f32
    %31 = vector.broadcast %cst_12 : f32 to vector<1x256xf32>
    %32 = arith.select %30, %25, %31 : vector<1x256xi1>, vector<1x256xf32>
    %33 = vector.shape_cast %32 : vector<1x256xf32> to vector<1x1x256xf32>
    %cst_13 = arith.constant dense<0.000000e+00> : vector<1xf32>
    %34 = vector.multi_reduction <add>, %33, %cst_13 [1, 2] : vector<1x1x256xf32> to vector<1xf32>
    %35 = vector.shape_cast %34 : vector<1xf32> to vector<1x1x1xf32>
    %36 = vector.extract %35[0, 0, 0] : f32 from vector<1x1x1xf32>
    %37 = arith.extui %30 : vector<1x256xi1> to vector<1x256xi32>
    %38 = arith.sitofp %37 : vector<1x256xi32> to vector<1x256xf32>
    %39 = vector.shape_cast %38 : vector<1x256xf32> to vector<1x1x256xf32>
    %cst_14 = arith.constant dense<0.000000e+00> : vector<1xf32>
    %40 = vector.multi_reduction <add>, %39, %cst_14 [1, 2] : vector<1x1x256xf32> to vector<1xf32>
    %41 = vector.shape_cast %40 : vector<1xf32> to vector<1x1x1xf32>
    %42 = vector.extract %41[0, 0, 0] : f32 from vector<1x1x1xf32>
    %43 = arith.extui %5 : vector<1x256xi1> to vector<1x256xi32>
    %44 = arith.sitofp %43 : vector<1x256xi32> to vector<1x256xf32>
    %45 = vector.shape_cast %44 : vector<1x256xf32> to vector<1x1x256xf32>
    %cst_15 = arith.constant dense<0.000000e+00> : vector<1xf32>
    %46 = vector.multi_reduction <add>, %45, %cst_15 [1, 2] : vector<1x1x256xf32> to vector<1xf32>
    %47 = vector.shape_cast %46 : vector<1xf32> to vector<1x1x1xf32>
    %48 = vector.extract %47[0, 0, 0] : f32 from vector<1x1x1xf32>
    %49 = tpu.iota {dimensions = array<i32: 0>} : vector<8x128xi32>
    %50 = tpu.iota {dimensions = array<i32: 1>} : vector<8x128xi32>
    %c0_i32 = arith.constant 0 : i32
    %51 = vector.broadcast %c0_i32 : i32 to vector<8x128xi32>
    %52 = arith.cmpi eq, %49, %51 : vector<8x128xi32>
    %c0_i32_16 = arith.constant 0 : i32
    %53 = vector.broadcast %c0_i32_16 : i32 to vector<8x128xi32>
    %54 = arith.cmpi eq, %50, %53 : vector<8x128xi32>
    %55 = arith.andi %52, %54 : vector<8x128xi1>
    %cst_17 = arith.constant 0.000000e+00 : f32
    %56 = vector.broadcast %36 : f32 to vector<8x128xf32>
    %57 = vector.broadcast %cst_17 : f32 to vector<8x128xf32>
    %58 = arith.select %55, %56, %57 : vector<8x128xi1>, vector<8x128xf32>
    %c0_i32_18 = arith.constant 0 : i32
    %59 = vector.broadcast %c0_i32_18 : i32 to vector<8x128xi32>
    %60 = arith.cmpi eq, %49, %59 : vector<8x128xi32>
    %c1_i32 = arith.constant 1 : i32
    %61 = vector.broadcast %c1_i32 : i32 to vector<8x128xi32>
    %62 = arith.cmpi eq, %50, %61 : vector<8x128xi32>
    %63 = arith.andi %60, %62 : vector<8x128xi1>
    %cst_19 = arith.constant 0.000000e+00 : f32
    %64 = vector.broadcast %42 : f32 to vector<8x128xf32>
    %65 = vector.broadcast %cst_19 : f32 to vector<8x128xf32>
    %66 = arith.select %63, %64, %65 : vector<8x128xi1>, vector<8x128xf32>
    %67 = arith.addf %58, %66 : vector<8x128xf32>
    %c0_i32_20 = arith.constant 0 : i32
    %68 = vector.broadcast %c0_i32_20 : i32 to vector<8x128xi32>
    %69 = arith.cmpi eq, %49, %68 : vector<8x128xi32>
    %c2_i32 = arith.constant 2 : i32
    %70 = vector.broadcast %c2_i32 : i32 to vector<8x128xi32>
    %71 = arith.cmpi eq, %50, %70 : vector<8x128xi32>
    %72 = arith.andi %69, %71 : vector<8x128xi1>
    %cst_21 = arith.constant 0.000000e+00 : f32
    %73 = vector.broadcast %48 : f32 to vector<8x128xf32>
    %74 = vector.broadcast %cst_21 : f32 to vector<8x128xf32>
    %75 = arith.select %72, %73, %74 : vector<8x128xi1>, vector<8x128xf32>
    %76 = arith.addf %67, %75 : vector<8x128xf32>
    %c0_22 = arith.constant 0 : index
    %c0_23 = arith.constant 0 : index
    %c0_24 = arith.constant 0 : index
    %77 = vector.load %arg5[%c0_22, %c0_23, %c0_24] : memref<1x8x128xf32, #tpu.memory_space<vmem>>, vector<1x8x128xf32>
    %78 = vector.shape_cast %77 : vector<1x8x128xf32> to vector<8x128xf32>
    %79 = vector.shape_cast %76 : vector<8x128xf32> to vector<1x8x128xf32>
    tpu.vector_store %arg5[%c0_22, %c0_23, %c0_24], %79 {strides = array<i32>} : memref<1x8x128xf32, #tpu.memory_space<vmem>>, vector<1x8x128xf32>,
    return
  }
  func.func @transform_0(%arg0: i32, %arg1: i32) -> (i32, i32, i32) {
    %c0_i32 = arith.constant 0 : i32
    %c0_i32_0 = arith.constant 0 : i32
    return %arg0, %c0_i32, %arg1 : i32, i32, i32
  }
  func.func @transform_1(%arg0: i32, %arg1: i32) -> (i32, i32, i32) {
    %c0_i32 = arith.constant 0 : i32
    %c0_i32_0 = arith.constant 0 : i32
    return %arg0, %c0_i32, %arg1 : i32, i32, i32
  }
  func.func @transform_2(%arg0: i32, %arg1: i32) -> (i32, i32, i32) {
    %c0_i32 = arith.constant 0 : i32
    %c0_i32_0 = arith.constant 0 : i32
    return %arg0, %c0_i32, %arg1 : i32, i32, i32
  }
  func.func @transform_3(%arg0: i32, %arg1: i32) -> (i32, i32, i32) {
    %c0_i32 = arith.constant 0 : i32
    %c0_i32_0 = arith.constant 0 : i32
    return %arg0, %arg1, %c0_i32 : i32, i32, i32
  }
}

</mosaic_0001>

<bundles_post_ra>
// kernel: tpu_custom_call.1
= control target key start
LH: loop header
LB: loop body
LE: loop exit
PB: predicated region body
PF: predicated region fallthrough
CT: control target
= control target key end

     0   :  { %9 = vsyncpa [#allocation3], 0  ;;  %s1202_s0 = inlined_call_operand.hbm [shape: f32[2,4,256], index: 0, kind: input, shape index: {}]   ;;  %s1203_s1 = inlined_call_operand.hbm [shape: s32[2,1,256], index: 1, kind: input, shape index: {}]   ;;  %s1204_s2 = inlined_call_operand.hbm [shape: f32[2,1,256], index: 2, kind: output, shape index: {0}]   ;;  %s1205_s3 = inlined_call_operand.hbm [shape: f32[2,8,128], index: 3, kind: output, shape index: {1}]  }
   0x1   :  { %11 = vsyncpa [#allocation3 + $0x1], 0 }
   0x2   :  { %12 = vsyncpa [#allocation6], 0 }
   0x3   :  { %14 = vsyncpa [#allocation6 + $0x1], 0 }
   0x4   :  { %15 = vsyncpa [#allocation4], 0 }
   0x5   :  { %17 = vsyncpa [#allocation4 + $0x1], 0 }
   0x6   :  { %18 = vsyncpa [#allocation9], 0 }
   0x7   :  { %20 = vsyncpa [#allocation9 + $0x1], 0  ;;  %s965_s12 = smov 0   ;;  %s967_s13 = smov 0  }
   0x8   :  { %s969_s14 = smov 0   ;;  %s971_s15 = smov 0  }
   0x9   :  { %s973_s16 = smov 0   ;;  %s975_s17 = smov 0  }
   0xa LB: > { %s651_s18 = sadd.s32 4294967295, %s937_s17   ;;  %s652_s19 = sadd.s32 4294967294, %s937_s17   ;;  %s937_s17 = sphi %s975_s17, %s26_s17   ;;  %s933_s16 = sphi %s973_s16, %s1217_s16   ;;  %s929_s15 = sphi %s971_s15, %s1216_s15   ;;  %s925_s14 = sphi %s969_s14, %s1215_s14   ;;  %s921_s13 = sphi %s967_s13, %s1214_s13   ;;  %s917_s12 = sphi %s965_s12, %s1213_s12  }
   0xb   : > { %s38_s20 = sadd.s32 1, %s933_s16  ;;  %s47_s21 = sadd.s32 1, %s925_s14 }
   0xc   : > { %p40_p0 = scmp.ge.s32.totalorder %s38_s20, 2  ;;  %p54_p1 = scmp.ne.s32.totalorder %s925_s14, %s921_s13 }
   0xd   : > { %p55_p2 = scmp.eq.s32.totalorder %s937_s17, 0  ;;  %p60_p3 = scmp.ne.s32.totalorder %s921_s13, %s917_s12 }
   0xe   : > { %s1219_s20 = smov (%p40_p0, %s38_s20), 0  ;;  %p61_p5 = scmp.eq.s32.totalorder %s651_s18, 0 }
   0xf   : > { %p1006_p4 = por %p55_p2, %p54_p1  ;;  %s42_s23 = ssub.s32 %s933_s16, %s1219_s20 }
  0x10   : > { %p114_p6 = scmp.eq.s32.totalorder %s651_s18, 1  ;;  %p45_p7 = scmp.eq.s32.totalorder %s42_s23, 0 }
  0x11   : > { %p1012_p8 = por %p61_p5, %p60_p3  ;;  %p120_p10 = scmp.eq.s32.totalorder %s652_s19, 1 }
  0x12   : > { %p1016_p9 = por %p114_p6, %p54_p1  ;;  %p708_p13 = scmp.lt.s32.totalorder %s937_s17, 2 }
  0x13   : > { %s1021_s26 = scalar_select %p45_p7, %s925_s14, %s47_s21  }
  0x14   : > { %p1023_p11 = por %p120_p10, %p60_p3  ;;  %s1030_s28 = sand.u32 1, %s925_s14  }
  0x15   : > { %s655_s29 = sshll.u32 %s1030_s28, 3  ;;  %s677_s30 = sshll.u32 %s933_s16, 7 }
  0x16   : > { %s180_s6 = scalar_lea.hbm %s1202_s0, %s677_s30  ;;  %s172_s7 = scalar_lea.vmem [#allocation2], %s655_s29 }
  0x17   : > { %s182_s8 = sshll.u32 %s172_s7, 4  ;;  %p1039_p0 = pnand %p708_p13, %p1006_p4  ;;  %s183_s8 = int_to_ptr.vmem [resolvable:$true] %s182_s8 }
  0x18   : > { %p661_p1 = scmp.ge.s32.totalorder %s937_s17, 1  ;;  %p208_p2 = scmp.lt.s32.totalorder %s937_s17, 3 }
  0x19   : > { %s169_s10 = scalar_lea.sflag [#allocation3], %s1030_s28  ;;  %p769_p3 = pneg %p1039_p0 }
  0x1a   : > { %s780_s11 = scalar_lea.vmem %s183_s8, 128  ;;  %s939_s18 = smov [#allocation2]  }
  0x1b   : > { %p781_p5 = scmp.ne.s32.totalorder %s183_s8, %s780_s11  ;;  %s785_s19 = sshll.u32 %s939_s18, 4  ;;  %s786_s19 = int_to_ptr.vmem [resolvable:$false] %s785_s19 }
  0x1c   : > { %s787_s21 = scalar_lea.vmem %s786_s19, 256  ;;  %p788_p4 = scmp.lt.s32.totalorder %s183_s8, %s786_s19 }
  0x1d   : > { %p783_p6 = pnand %p781_p5, %p769_p3  ;;  %p789_p10 = scmp.lt.s32.totalorder %s787_s21, %s780_s11 }
  0x1f   : > { %p784_p7 = pneg %p783_p6  ;;  %p790_p13 = por %p789_p10, %p788_p4 }
  0x21   : > { %p791_p12 = pnand %p790_p13, %p784_p7 }
  0x23   : > { %794 = shalt.err (!%p791_p12)
}
  0x24   : > { %697 = dma.hbm_to_vmem [thread:$0]  (!%p1039_p0), %s180_s6, 128, %s183_s8, %s169_s10  }
  0x25   : > { %p1057_p5 = pnand %p661_p1, %p208_p2  ;;  %s658_s23 = sshll.u32 %s1030_s28, 1 }
  0x26   : > { %s678_s29 = sshll.u32 %s933_s16, 5  ;;  %s193_s7 = scalar_lea.vmem [#allocation5], %s658_s23 }
  0x27   : > { %s201_s5 = scalar_lea.hbm %s1203_s1, %s678_s29  ;;  %s203_s11 = sshll.u32 %s193_s7, 4  ;;  %s204_s11 = int_to_ptr.vmem [resolvable:$true] %s203_s11 }
  0x28   : > { %s190_s18 = scalar_lea.sflag [#allocation6], %s1030_s28  ;;  %s808_s19 = scalar_lea.vmem %s204_s11, 32 }
  0x29   : > { %p809_p12 = scmp.ne.s32.totalorder %s204_s11, %s808_s19  ;;  %s940_s6 = smov [#allocation5]  }
  0x2a   : > { %s813_s8 = sshll.u32 %s940_s6, 4  ;;  %s814_s8 = int_to_ptr.vmem [resolvable:$false] %s813_s8 }
  0x2b   : > { %p811_p6 = pnand %p809_p12, %p769_p3  ;;  %s815_s10 = scalar_lea.vmem %s814_s8, 64 }
  0x2c   : > { %p816_p1 = scmp.lt.s32.totalorder %s204_s11, %s814_s8  ;;  %p817_p2 = scmp.lt.s32.totalorder %s815_s10, %s808_s19 }
  0x2d   : > { %p812_p7 = pneg %p811_p6 }
  0x2e   : > { %p818_p4 = por %p817_p2, %p816_p1 }
  0x30   : > { %p819_p10 = pnand %p818_p4, %p812_p7 }
  0x32   : > { %822 = shalt.err (!%p819_p10)
}
  0x33   : > { %700 = dma.hbm_to_vmem [thread:$0]  (!%p1039_p0), %s201_s5, 32, %s204_s11, %s190_s18  }
  0x34   : > { %212 = sbr.rel (%p1057_p5) target bundleno = 369 (0x171), region = 28  ;;  %s1075_s28 = sand.u32 (!%p1057_p5), 1, %s921_s13  }
  0x35   : > { %s662_s21 = sshll.u32 (!%p1057_p5), %s1075_s28, 3  ;;  %s215_s23 = scalar_lea.sflag (!%p1057_p5), [#allocation3], %s1075_s28 }
  0x36   : > { %s218_s29 = scalar_lea.vmem (!%p1057_p5), [#allocation2], %s662_s21 }
  0x39   : > { %900 = dma.done.wait (%p1012_p8), %s215_s23, 128  }
  0x3a   : > { %902 = vsyncadd (%p1012_p8), %s215_s23, 4294967168  ;;  %s663_s9 = sshll.u32 %s1075_s28, 1  ;;  %s224_s22 = scalar_lea.sflag [#allocation6], %s1075_s28 }
  0x3b   : > { %s227_s30 = scalar_lea.vmem [#allocation5], %s663_s9 }
  0x3c   : > { %904 = dma.done.wait (%p1012_p8), %s224_s22, 32  }
  0x3d   : > { %906 = vsyncadd (%p1012_p8), %s224_s22, 4294967264  ;;  %v314_v0 = vlaneseq  ;;  %vm269_vm0 = vcmask 1043456   ;;  %v1096_v2 = vld [vmem:[%s227_s30] sm:$0x3]  ;;  %v263_v3 = vld [vmem:[%s218_s29] sm:$0xff]  ;;  %vm391_vm2 = vcmask 1040384  }
  0x3e   : > { %vm265_vm1 = vcmp.ne.s32.totalorder %v1096_v2, 255  ;;  %v267_v6 = vcombine.high %v263_v3, %v263_v3  ;;  %v941_v7 = vmov 0.0   ;;  %v270_v9 = vsel %vm269_vm0, %v263_v3, -inf  ;;  %s252_s24 = scalar_lea.vmem [#allocation7], %s663_s9  ;;  %s679_s4 = sshll.u32 %s929_s15, 5 }
  0x3f   : > { %v1094_v1 = vshrl.u32 %v314_v0, 7  ;;  %v669_v8 = vsel %vm265_vm1, 1.0, %v941_v7  ;;  %v271_v12 = vrot.slane %v270_v9, 4  ;;  %vm375_vm6 = vcmp.lt.s32.totalorder %v314_v0, 256  ;;  %s494_s5 = sshll.u32 %s252_s24, 4  ;;  %s492_s18 = scalar_lea.hbm %s1204_s2, %s679_s4  ;;  %s495_s5 = int_to_ptr.vmem [resolvable:$true] %s494_s5 }
  0x40   : > { %v277_v13 = vsel %vm269_vm0, %v267_v6, -inf  ;;  %v942_v6 = vmov 1966171168   ;;  %s473_s19 = scalar_lea.sflag [#allocation4], %s1075_s28  ;;  %s823_s6 = scalar_lea.vmem %s495_s5, 32 }
  0x41   : > { %v1100_v4 = vsub.s32 0, %v1094_v1  ;;  %v1103_v5 = vsub.s32 1, %v1094_v1  ;;  %v278_v16 = vrot.slane %v277_v13, 4  ;;  %v272_v18 = vmax.f32 %v270_v9, %v271_v12  ;;  %p824_p8 = scmp.ne.s32.totalorder %s495_s5, %s823_s6  ;;  %s943_s8 = smov [#allocation7]  }
  0x42   : > { %s827_s10 = sshll.u32 %s943_s8, 4  ;;  %s828_s10 = int_to_ptr.vmem [resolvable:$false] %s827_s10 }
  0x43   : > { %v435_v10 = vrot.slane %v669_v8, %v1100_v4  ;;  %v439_v11 = vrot.slane %v669_v8, %v1103_v5  ;;  %v279_v19 = vmax.f32 %v277_v13, %v278_v16  ;;  %v273_v20 = vrot.slane %v272_v18, 2  ;;  %p825_p0 = pnand %p824_p8, %p1016_p9  ;;  %s829_s23 = scalar_lea.vmem %s828_s10, 64 }
  0x44   : > { %v319_v30 = vrot.slane %v1096_v2, %v1100_v4  ;;  %v323_v31 = vrot.slane %v1096_v2, %v1103_v5  ;;  %v358_v8 = vunpack.c.l.s4 %v942_v6  ;;  %p830_p13 = scmp.lt.s32.totalorder %s495_s5, %s828_s10  ;;  %p831_p5 = scmp.lt.s32.totalorder %s829_s23, %s823_s6 }
  0x45   : > { %v442_v14 = vsel %vm391_vm2, %v435_v10, 0.0  ;;  %v443_v15 = vsel %vm391_vm2, %v439_v11, 0.0  ;;  %v280_v21 = vrot.slane %v279_v19, 2  ;;  %v274_v22 = vmax.f32 %v272_v18, %v273_v20  ;;  %p826_p3 = pneg %p825_p0 }
  0x46   : > { %v444_v17 = vadd.f32 %v443_v15, %v442_v14  ;;  %vm324_vm3 = vcmp.eq.s32.totalorder %v1094_v1, %v319_v30  ;;  %vm325_vm4 = vcmp.eq.s32.totalorder %v1094_v1, %v323_v31  ;;  %v359_v14 = vunpack.c.0.s8 %v358_v8  ;;  %p832_p12 = por %p831_p5, %p830_p13 }
  0x47   : > { %v281_v23 = vmax.f32 %v279_v19, %v280_v21  ;;  %v275_v24 = vrot.slane %v274_v22, 1  ;;  %v666_v33 = vsel %vm324_vm3, 1.0, %v941_v7  ;;  %v667_v34 = vsel %vm325_vm4, 1.0, %v941_v7 }
  0x48   : > { %445 = vadd.xlane.f32.xlu1 %v444_v17  ;;  %v332_v35 = vcombine.low %v666_v33, %v667_v34  ;;  %v362_v20 = vsub.s32 %v359_v14, %v1094_v1  ;;  %p833_p6 = pnand %p832_p12, %p826_p3 }
  0x49   : > { %v282_v25 = vrot.slane %v281_v23, 1  ;;  %v276_v26 = vmax.f32 %v274_v22, %v275_v24 }
  0x4a   : > { %v334_v36 = vmul.f32 %v332_v35, %v263_v3 }
  0x4b   : > { %v283_v27 = vmax.f32 %v281_v23, %v282_v25 }
  0x4c   : > { %v336_v42 = vcombine.high %v334_v36, %v334_v36  ;;  %v338_v45 = vsel %vm269_vm0, %v334_v36, 0.0 }
  0x4d   : > { %v286_v28 = vcombine.low %v276_v26, %v283_v27  ;;  %v339_v51 = vrot.slane %v338_v45, 4 }
  0x4e   : > { %v345_v48 = vsel %vm269_vm0, %v336_v42, 0.0 }
  0x4f   : > { %v288_v29 = vsub.f32 %v263_v3, %v286_v28  ;;  %v346_v54 = vrot.slane %v345_v48, 4  ;;  %v340_v57 = vadd.f32 %v339_v51, %v338_v45 }
  0x51   : > { %v289_v32 = vmul.f32 1.442695, %v288_v29  ;;  %v347_v59 = vadd.f32 %v346_v54, %v345_v48  ;;  %v341_v60 = vrot.slane %v340_v57, 2 }
  0x53   : > { %761 = vpow2.f32 %v289_v32  ;;  %v348_v61 = vrot.slane %v347_v59, 2  ;;  %v342_v62 = vadd.f32 %v341_v60, %v340_v57 }
  0x55   : > { %v349_v63 = vadd.f32 %v348_v61, %v347_v59  ;;  %v343_v3 = vrot.slane %v342_v62, 1 }
  0x57   : > { %v350_v9 = vrot.slane %v349_v63, 1  ;;  %v344_v12 = vadd.f32 %v343_v3, %v342_v62 }
  0x59   : > { %v351_v17 = vadd.f32 %v350_v9, %v349_v63 }
  0x60   : > { %v762_v37 = vpop.eup %761 }
  0x61   : > { %v292_v38 = vcombine.high %v762_v37, %v762_v37  ;;  %v294_v39 = vsel %vm269_vm0, %v762_v37, 0.0 }
  0x62   : > { %v295_v40 = vrot.slane %v294_v39, 4 }
  0x63   : > { %v301_v41 = vsel %vm269_vm0, %v292_v38, 0.0 }
  0x64   : > { %v296_v43 = vadd.f32 %v295_v40, %v294_v39  ;;  %v302_v44 = vrot.slane %v301_v41, 4 }
  0x66   : > { %v297_v46 = vrot.slane %v296_v43, 2  ;;  %v303_v47 = vadd.f32 %v302_v44, %v301_v41 }
  0x68   : > { %v298_v49 = vadd.f32 %v297_v46, %v296_v43  ;;  %v304_v50 = vrot.slane %v303_v47, 2 }
  0x6a   : > { %v299_v52 = vrot.slane %v298_v49, 1  ;;  %v305_v53 = vadd.f32 %v304_v50, %v303_v47 }
  0x6c   : > { %v300_v55 = vadd.f32 %v299_v52, %v298_v49  ;;  %v306_v56 = vrot.slane %v305_v53, 1 }
  0x6e   : > { %v307_v58 = vadd.f32 %v306_v56, %v305_v53  ;;  %763 = vlog2.f32 %v300_v55 }
  0x70   : > { %765 = vlog2.f32 %v307_v58 }
  0x7b   : > { %v764_v10 = vpop.eup %763 }
  0x7c   : > { %v309_v11 = vmul.f32 0.6931472, %v764_v10 }
  0x7d   : > { %v766_v13 = vpop.eup %765 }
  0x7e   : > { %v311_v15 = vmul.f32 0.6931472, %v766_v13  ;;  %v312_v16 = vadd.f32 %v309_v11, %v276_v26 }
  0x80   : > { %v313_v18 = vadd.f32 %v311_v15, %v283_v27  ;;  %v352_v19 = vsub.f32 %v312_v16, %v344_v12 }
  0x82   : > { %v353_v21 = vsub.f32 %v313_v18, %v351_v17 }
  0x84   : > { %v356_v22 = vcombine.low %v352_v19, %v353_v21 }
  0x86   : > { %v363_v23 = vrot.slane %v356_v22, %v362_v20 }
  0x88   : > { %v370_v24 = vrot.slane %v363_v23, %v362_v20 }
  0x8a   : > { %v372_v25 = vsel %vm265_vm1, %v370_v24, 0.0 }
  0x8b   : > { %vm378_vm5 = vcmp.gt.f32.partialorder %v372_v25, 0.35667494  ;;  %377 = vst.msk [vmem:[%s252_s24] sm:$0x3] %vm375_vm6, %v372_v25 }
  0x8c   : > { %v379_v28 = vsel %vm378_vm5, %v372_v25, 0.0  ;;  %v668_v29 = vsel %vm378_vm5, 1.0, %v941_v7 }
  0x8d   : > { %v384_v26 = vrot.slane %v379_v28, %v1100_v4  ;;  %v388_v27 = vrot.slane %v379_v28, %v1103_v5  ;;  %v410_v30 = vrot.slane %v668_v29, %v1100_v4  ;;  %v414_v31 = vrot.slane %v668_v29, %v1103_v5 }
  0x8f   : > { %v392_v32 = vsel %vm391_vm2, %v384_v26, 0.0  ;;  %v393_v2 = vsel %vm391_vm2, %v388_v27, 0.0  ;;  %v417_v33 = vsel %vm391_vm2, %v410_v30, 0.0  ;;  %v418_v34 = vsel %vm391_vm2, %v414_v31, 0.0 }
  0x90   : > { %v394_v7 = vadd.f32 %v393_v2, %v392_v32  ;;  %v419_v35 = vadd.f32 %v418_v34, %v417_v33 }
  0x92   : > { %395 = vadd.xlane.f32.xlu0 %v394_v7 }
  0x96   : > { %420 = vadd.xlane.f32.xlu0 %v419_v35 }
  0x97   : > { %836 = shalt.err (!%p833_p6)
}
  0x98   : > { %s837_s29 = scalar_lea.hbm %s492_s18, 32  ;;  %s841_s30 = scalar_lea.hbm %s1204_s2, 64 }
  0x99   : > { %p838_p7 = scmp.ne.s32.totalorder %s492_s18, %s837_s29  ;;  %p842_p4 = scmp.lt.s32.totalorder %s492_s18, %s1204_s2 }
  0x9a   : > { %p843_p10 = scmp.lt.s32.totalorder %s841_s30, %s837_s29 }
  0x9b   : > { %p839_p1 = pnand %p838_p7, %p1016_p9 }
  0x9c   : > { %p844_p8 = por %p843_p10, %p842_p4 }
  0x9d   : > { %p840_p2 = pneg %p839_p1 }
  0x9f   : > { %p845_p0 = pnand %p844_p8, %p840_p2 }
  0xa1   : > { %848 = shalt.err (!%p845_p0)
}
  0xa2   : > { %690 = dma.vmem_to_hbm [thread:$0]  (%p1016_p9), %s495_s5, 32, %s492_s18, %s473_s19   ;;  %v455_v55 = vand.u32 127, %v314_v0  ;;  %vm456_vm7 = vcmp.eq.s32.totalorder %v1094_v1, 0 }
  0xa3   : > { %s674_s18 = sshll.u32 %s929_s15, 7  ;;  %s259_s19 = scalar_lea.vmem [#allocation8], %s662_s21 }
  0xa4   : > { %vm457_vm8 = vcmp.eq.s32.totalorder %v455_v55, 0  ;;  %vm461_vm9 = vcmp.eq.s32.totalorder %v455_v55, 1  ;;  %vm466_vm11 = vcmp.eq.s32.totalorder %v455_v55, 2  ;;  %s508_s6 = sshll.u32 %s259_s19, 4  ;;  %s506_s23 = scalar_lea.hbm %s1205_s3, %s674_s18  ;;  %s509_s6 = int_to_ptr.vmem [resolvable:$true] %s508_s6 }
  0xa5   : > { %vm458_vm10 = vmand %vm456_vm7, %vm457_vm8  ;;  %s478_s29 = scalar_lea.sflag [#allocation9], %s1075_s28  ;;  %s849_s9 = scalar_lea.vmem %s509_s6, 128 }
  0xa6   : > { %vm462_vm12 = vmand %vm456_vm7, %vm461_vm9  ;;  %p850_p3 = scmp.ne.s32.totalorder %s509_s6, %s849_s9  ;;  %s944_s22 = smov [#allocation8]  }
  0xa7   : > { %vm467_vm13 = vmand %vm456_vm7, %vm466_vm11  ;;  %s853_s15 = sshll.u32 %s944_s22, 4  ;;  %s854_s15 = int_to_ptr.vmem [resolvable:$false] %s853_s15 }
  0xa8   : > { %p851_p13 = pnand %p850_p3, %p1016_p9  ;;  %s855_s21 = scalar_lea.vmem %s854_s15, 256 }
  0xa9   : > { %p856_p12 = scmp.lt.s32.totalorder %s509_s6, %s854_s15  ;;  %p857_p6 = scmp.lt.s32.totalorder %s855_s21, %s849_s9 }
  0xaa   : > { %p852_p5 = pneg %p851_p13 }
  0xab   : > { %p858_p7 = por %p857_p6, %p856_p12 }
  0xad   : > { %p859_p1 = pnand %p858_p7, %p852_p5 }
  0xd1   : > { %v446_v4 = vpop.xlane.xlu1 %445 }
  0xd2   : > { %v447_v5 = vrot.slane %v446_v4, 4 }
  0xd4   : > { %v448_v36 = vadd.f32 %v447_v5, %v446_v4 }
  0xd6   : > { %v449_v40 = vrot.slane %v448_v36, 2 }
  0xd8   : > { %v450_v46 = vadd.f32 %v449_v40, %v448_v36 }
  0xda   : > { %v451_v51 = vrot.slane %v450_v46, 1 }
  0xdc   : > { %v452_v54 = vadd.f32 %v451_v51, %v450_v46 }
 0x11b   : > { %v396_v37 = vpop.xlane.xlu0 %395 }
 0x11c   : > { %v397_v38 = vrot.slane %v396_v37, 4 }
 0x11e   : > { %v398_v39 = vadd.f32 %v397_v38, %v396_v37 }
 0x11f   : > { %v421_v41 = vpop.xlane.xlu0 %420 }
 0x120   : > { %v399_v42 = vrot.slane %v398_v39, 2  ;;  %v422_v43 = vrot.slane %v421_v41, 4 }
 0x122   : > { %v423_v44 = vadd.f32 %v422_v43, %v421_v41  ;;  %v400_v45 = vadd.f32 %v399_v42, %v398_v39 }
 0x124   : > { %v424_v47 = vrot.slane %v423_v44, 2  ;;  %v401_v48 = vrot.slane %v400_v45, 1 }
 0x126   : > { %v425_v49 = vadd.f32 %v424_v47, %v423_v44  ;;  %v402_v50 = vadd.f32 %v401_v48, %v400_v45 }
 0x128   : > { %680 = vpush %v402_v50  ;;  %v426_v52 = vrot.slane %v425_v49, 1 }
 0x12a   : > { %v427_v53 = vadd.f32 %v426_v52, %v425_v49 }
 0x12c   : > { %682 = vpush %v427_v53 }
 0x12d   : > { %684 = vpush %v452_v54 }
 0x159   : > { %s681_s5 = spop %680 }
 0x15a   : > { %v459_v56 = vstv %s681_s5 }
 0x15b   : > { %v460_v58 = vsel %vm458_vm10, %v459_v56, 0.0 }
 0x15d   : > { %s683_s7 = spop %682 }
 0x15e   : > { %v463_v57 = vstv %s683_s7  ;;  %s685_s11 = spop %684 }
 0x15f   : > { %v464_v59 = vsel %vm462_vm12, %v463_v57, 0.0  ;;  %v468_v0 = vstv %s685_s11 }
 0x160   : > { %v465_v1 = vadd.f32 %v464_v59, %v460_v58  ;;  %v469_v60 = vsel %vm467_vm13, %v468_v0, 0.0 }
 0x162   : > { %v470_v61 = vadd.f32 %v469_v60, %v465_v1 }
 0x164   : > { %471 = vst [vmem:[%s259_s19] sm:$0xff] %v470_v61 }
 0x165   : > { %862 = shalt.err (!%p859_p1)
}
 0x166   : > { %s863_s30 = scalar_lea.hbm %s506_s23, 128  ;;  %s867_s4 = scalar_lea.hbm %s1205_s3, 256 }
 0x167   : > { %p864_p2 = scmp.ne.s32.totalorder %s506_s23, %s863_s30  ;;  %p868_p8 = scmp.lt.s32.totalorder %s506_s23, %s1205_s3 }
 0x168   : > { %p869_p0 = scmp.lt.s32.totalorder %s867_s4, %s863_s30 }
 0x169   : > { %p865_p4 = pnand %p864_p2, %p1016_p9 }
 0x16a   : > { %p870_p3 = por %p869_p0, %p868_p8 }
 0x16b   : > { %p866_p10 = pneg %p865_p4 }
 0x16d   : > { %p871_p13 = pnand %p870_p3, %p866_p10 }
 0x16f   : > { %874 = shalt.err (!%p871_p13)
}
 0x170   : > { %691 = dma.vmem_to_hbm [thread:$0]  (%p1016_p9), %s509_s6, 128, %s506_s23, %s478_s29  }
 0x171 PF: > { %s520_s11 = sand.u32 1, %s917_s12   ;;  %p1212_p5 = scmp.ge.s32.totalorder %s937_s17, 2 }
 0x172   : > { %s521_s18 = scalar_lea.sflag [#allocation4], %s520_s11 }
 0x173   : > { %p702_p12 = pnand %p1212_p5, %p1023_p11 }
 0x175   : > { %p703_p6 = pneg %p702_p12 }
 0x177   : > { %908 = dma.done.wait (%p703_p6), %s521_s18, 32  }
 0x178   : > { %910 = vsyncadd (%p703_p6), %s521_s18, 4294967264  ;;  %s530_s19 = scalar_lea.sflag [#allocation9], %s520_s11 }
 0x179   : > { %912 = dma.done.wait (%p703_p6), %s530_s19, 128  }
 0x17a   : > { %914 = vsyncadd (%p703_p6), %s530_s19, 4294967168  ;;  %s26_s17 = sadd.s32 1, %s937_s17   ;;  %s1213_s12 = smov %s921_s13 }
 0x17b   : > { %p23_p7 = scmp.ge.s32.totalorder %s26_s17, 4   ;;  %s1214_s13 = smov %s925_s14 }
 0x17c   : > { %s1215_s14 = smov %s1021_s26  ;;  %s1216_s15 = smov %s933_s16 }
 0x17d   : > { %s1217_s16 = smov %s1219_s20  ;;  %25 = sbr.rel (!%p23_p7) target bundleno = 10 (0xa), region = 103 }
 0x182   :  { %535 = vsyncpa [#allocation3], 1 }
 0x183   :  { %537 = vsyncpa [#allocation3 + $0x1], 1 }
 0x184   :  { %538 = vsyncpa [#allocation6], 1 }
 0x185   :  { %540 = vsyncpa [#allocation6 + $0x1], 1 }
 0x186   :  { %541 = vsyncpa [#allocation4], 1 }
 0x187   :  { %543 = vsyncpa [#allocation4 + $0x1], 1 }
 0x188   :  { %544 = vsyncpa [#allocation9], 1 }
 0x189   :  { %546 = vsyncpa [#allocation9 + $0x1], 1 }

</bundles_post_ra>
